<compile_context>
chip_gen: v6e
topology: v6e:2x2x1
jax: 0.10.0
libtpu: 0.0.40
codegen_flags: <defaults>
</compile_context>

<pallas_src>
import functools
import math

import jax
import jax.numpy as jnp
import numpy as np
from jax.experimental import pallas as pl
from jax.experimental.pallas import tpu as pltpu

# ----------------------------- static config --------------------------------
NUM_POI_TYPES = 134            # T  (conv 'valid' output length L = 128)
EMB_SIZE = 32                  # emb_size
NEG_SIZE = 4                   # N
POS_SIZE = 3                   # P  (delete / add / replace augmentations)
TEMP = 0.1

KSIZE = 7
OUT_CH = 4
L = NUM_POI_TYPES - (KSIZE - 1)          # 128
B = 1 + POS_SIZE + NEG_SIZE              # 8 rows per contrastive set
FLAT = OUT_CH * L                        # 512

MAX_GROUP_TILE = 1024                    # 8192 rows/step; ~20-24 MB VMEM double-buffered


def _choose_group_tile(G: int) -> int:
    """Largest tile that amortizes per-step overhead while keeping >=2 grid
    steps when possible (v7x megacore) and staying inside the VMEM budget."""
    if G <= 2 * MAX_GROUP_TILE:
        tile = (G + 1) // 2                       # aim for a 2-step grid
        tile = max(8, ((tile + 7) // 8) * 8)      # sublane-aligned group count
        return min(tile, MAX_GROUP_TILE)
    return MAX_GROUP_TILE


# ------------------------------- kernel --------------------------------------
def poi_ssl_kernel(x_ref, w_ref, b_ref, emb_ref, loss_ref, *, group_tile):
    """One grid step: `group_tile` contrastive sets (group_tile * B rows).

    x_ref   : (rows, T)  VMEM bf16  normalized poi-type histograms
    w_ref   : (T, E)     VMEM bf16  folded conv+linear weight (grid-resident)
    b_ref   : (1, E)     VMEM f32   folded bias
    emb_ref : (rows, E)  VMEM f32   all embeddings (base | pos | neg rows)
    loss_ref: (groups,1) VMEM f32   per-set contrastive loss
    """
    # ---- fused (Conv1d -> Flatten -> Linear) as one MXU matmul, f32 acc -----
    emb = jnp.dot(x_ref[...], w_ref[...],
                  preferred_element_type=jnp.float32) + b_ref[...]     # (R, E)
    emb_ref[...] = emb

    # ---- per-set scores: VPU multiply + lane reduce (no degenerate matmul) --
    emb3 = emb.reshape(group_tile, B, EMB_SIZE)       # split sublane dim by B=8
    base = emb3[:, 0:1, :]                            # (G, 1, E)
    dots = jnp.sum(emb3 * base, axis=-1)              # (G, B); col 0 = self.self
    scores = dots * (1.0 / TEMP)

    # ---- log-softmax over the P+N candidates (col 0 masked out) -------------
    col = jax.lax.broadcasted_iota(jnp.int32, scores.shape, 1)
    cand = col >= 1                                   # exclude the self column
    s = jnp.where(cand, scores, jnp.float32(-1e30))
    m = jnp.max(s, axis=-1, keepdims=True)
    p = jnp.where(cand, jnp.exp(s - m), 0.0)
    lse = m + jnp.log(jnp.sum(p, axis=-1, keepdims=True))
    log_sm = s - lse
    labels = jnp.logical_and(col >= 1, col <= POS_SIZE).astype(jnp.float32)
    loss_ref[...] = (-jnp.sum(log_sm * labels, axis=-1, keepdims=True)
                     * (1.0 / POS_SIZE))


# ------------------------------- wrapper --------------------------------------
def _fold_conv_linear(conv_w, conv_b, lin_w, lin_b):
    """Fold Conv1d(1->4,k=7) + Flatten + Linear(4L->E) into W_eff (T,E), b_eff (E,)."""
    lw3 = lin_w.reshape(EMB_SIZE, OUT_CH, L)          # channel-major flatten (torch .view)
    w_eff = jnp.zeros((NUM_POI_TYPES, EMB_SIZE), jnp.float32)
    for k in range(KSIZE):
        # coefficient of x[:, k + j] contributed by conv tap k over all channels
        w_eff = w_eff.at[k:k + L, :].add(
            jnp.einsum('c,ecl->le', conv_w[:, k], lw3))
    b_eff = lin_b + jnp.einsum('c,ec->e', conv_b, jnp.sum(lw3, axis=2))
    return w_eff, b_eff


@jax.jit
def poi_ssl_forward(x, conv_w, conv_b, lin_w, lin_b):
    """Batched ReMVC POI_SSL forward.

    x: (G, B, T) — per contrastive set: row 0 = base region histogram,
       rows 1..P = positive augmentations, rows P+1..P+N = negatives.
    Returns (loss (G,), base_emb (G, E), neg_emb (G, N, E)).
    """
    G = x.shape[0]
    group_tile = _choose_group_tile(G)
    rows_tile = group_tile * B
    num_steps = (G + group_tile - 1) // group_tile    # ragged tail handled by Pallas

    w_eff, b_eff = _fold_conv_linear(conv_w, conv_b, lin_w, lin_b)
    # bf16 on the dominant input stream (the cast fuses into the upstream
    # histogram normalization when it is traced in the same jit); the MXU
    # accumulates in f32 so the outputs remain f32.
    x2 = x.reshape(G * B, NUM_POI_TYPES).astype(jnp.bfloat16)
    w_bf = w_eff.astype(jnp.bfloat16)

    emb, loss = pl.pallas_call(
        functools.partial(poi_ssl_kernel, group_tile=group_tile),
        grid=(num_steps,),
        out_shape=(
            jax.ShapeDtypeStruct((G * B, EMB_SIZE), jnp.float32),
            jax.ShapeDtypeStruct((G, 1), jnp.float32),
        ),
        in_specs=[
            pl.BlockSpec((rows_tile, NUM_POI_TYPES), lambda g: (g, 0)),   # x tile
            pl.BlockSpec((NUM_POI_TYPES, EMB_SIZE), lambda g: (0, 0)),    # W_eff (resident)
            pl.BlockSpec((1, EMB_SIZE), lambda g: (0, 0)),                # b_eff (resident)
        ],
        out_specs=(
            pl.BlockSpec((rows_tile, EMB_SIZE), lambda g: (g, 0)),        # embeddings
            pl.BlockSpec((group_tile, 1), lambda g: (g, 0)),              # losses
        ),
        compiler_params=pltpu.CompilerParams(
            dimension_semantics=("parallel",),
            vmem_limit_bytes=48 * 1024 * 1024),
    )(x2, w_bf, b_eff.reshape(1, EMB_SIZE))

    emb = emb.reshape(G, B, EMB_SIZE)
    return loss[:, 0], emb[:, 0, :], emb[:, 1 + POS_SIZE:, :]


# --------------------------- pure-JAX reference -------------------------------
def _poi_ssl_reference_one(x, conv_w, conv_b, lin_w, lin_b):
    # explicit Conv1d (valid) -> channel-major flatten -> Linear, like the module
    cols = jnp.stack([x[:, k:k + L] for k in range(KSIZE)], axis=-1)     # (B, L, K)
    conv = jnp.einsum('blk,ck->bcl', cols, conv_w) + conv_b[None, :, None]
    flat = conv.reshape(B, FLAT)
    emb = flat @ lin_w.T + lin_b
    base = emb[0]
    scores = emb[1:] @ base / TEMP
    labels = jnp.concatenate([jnp.ones(POS_SIZE), jnp.zeros(NEG_SIZE)])
    loss = -(jax.nn.log_softmax(scores, axis=0) * labels).sum() / labels.sum()
    return loss, base, emb[1 + POS_SIZE:]


poi_ssl_reference = jax.jit(jax.vmap(_poi_ssl_reference_one,
                                     in_axes=(0, None, None, None, None)))


# ---------------------------------- main ---------------------------------------
if __name__ == "__main__":
    key = jax.random.PRNGKey(0)
    k_x, k_cw, k_cb, k_lw, k_lb = jax.random.split(key, 5)

    # deterministic parameter init (shapes from the module's __init__)
    conv_w = 0.1 * jax.random.normal(k_cw, (OUT_CH, KSIZE), jnp.float32)
    conv_b = 0.1 * jax.random.normal(k_cb, (OUT_CH,), jnp.float32)
    lin_w = (1.0 / math.sqrt(FLAT)) * jax.random.normal(
        k_lw, (EMB_SIZE, FLAT), jnp.float32)
    lin_b = 0.1 * jax.random.normal(k_lb, (EMB_SIZE,), jnp.float32)

    # G=64 divides the chosen tile exactly; G=200 exercises the ragged final
    # block (no jnp.pad copy — Pallas drops the out-of-range stores).
    for G in (64, 200):
        kk = jax.random.fold_in(k_x, G)
        counts = jax.random.randint(kk, (G, B, NUM_POI_TYPES), 0, 5).astype(jnp.float32)
        sums = jnp.sum(counts, axis=-1, keepdims=True)
        x = jnp.where(sums > 0, counts / jnp.maximum(sums, 1.0), 0.0)   # normalized histograms

        loss, base_emb, neg_emb = poi_ssl_forward(x, conv_w, conv_b, lin_w, lin_b)
        jax.block_until_ready((loss, base_emb, neg_emb))

        loss_r, base_r, neg_r = poi_ssl_reference(x, conv_w, conv_b, lin_w, lin_b)
        # tolerances loosened vs. the all-f32 version because x / W_eff enter
        # the kernel as bf16 (values are <=1 histograms, so the loss is benign).
        np.testing.assert_allclose(np.asarray(loss), np.asarray(loss_r),
                                   rtol=5e-2, atol=5e-2)
        np.testing.assert_allclose(np.asarray(base_emb), np.asarray(base_r),
                                   rtol=2e-2, atol=3e-3)
        np.testing.assert_allclose(np.asarray(neg_emb), np.asarray(neg_r),
                                   rtol=2e-2, atol=3e-3)

    # TODO(synk): host-side poi-id -> histogram aggregation and the random
    # positive/negative set sampling from the original module remain host glue.
    print("KERNEL_OK")
</pallas_src>

<mosaic_0001>
module attributes {stable_mosaic.version = 11 : i64} {
  func.func @poi_ssl_kernel(%arg0: i32, %arg1: memref<256x134xbf16, #tpu.memory_space<vmem>>, %arg2: memref<134x32xbf16, #tpu.memory_space<vmem>>, %arg3: memref<1x32xf32, #tpu.memory_space<vmem>>, %arg4: memref<256x32xf32, #tpu.memory_space<vmem>>, %arg5: memref<32x1xf32, #tpu.memory_space<vmem>>) attributes {dimension_semantics = [#tpu.dimension_semantics<parallel>], iteration_bounds = array<i64: 2>, scalar_prefetch = 0 : i64, scratch_operands = 0 : i64, tpu.core_type = #tpu.core_type<tc>, window_params = [{transform_indices = @transform_0, window_bounds = array<i64: 256, 134>}, {pipeline_mode = #tpu.pipeline_mode<synchronous>, transform_indices = @transform_1, window_bounds = array<i64: 134, 32>}, {pipeline_mode = #tpu.pipeline_mode<synchronous>, transform_indices = @transform_2, window_bounds = array<i64: 1, 32>}, {transform_indices = @transform_3, window_bounds = array<i64: 256, 32>}, {transform_indices = @transform_4, window_bounds = array<i64: 32, 1>}]} {
    %c0 = arith.constant 0 : index
    %c0_0 = arith.constant 0 : index
    %0 = vector.load %arg1[%c0, %c0_0] : memref<256x134xbf16, #tpu.memory_space<vmem>>, vector<256x134xbf16>
    %c0_1 = arith.constant 0 : index
    %c0_2 = arith.constant 0 : index
    %1 = vector.load %arg2[%c0_1, %c0_2] : memref<134x32xbf16, #tpu.memory_space<vmem>>, vector<134x32xbf16>
    %cst = arith.constant dense<0.000000e+00> : vector<256x32xf32>
    %2 = tpu.matmul %0, %1, %cst {dimension_numbers = #tpu.dot_dimension_numbers<[1], [0], [0], [1], [0, 0, 1, 1], [], []>} : vector<256x134xbf16>, vector<134x32xbf16>, vector<256x32xf32> -> vector<256x32xf32>
    %c0_3 = arith.constant 0 : index
    %c0_4 = arith.constant 0 : index
    %3 = vector.load %arg3[%c0_3, %c0_4] : memref<1x32xf32, #tpu.memory_space<vmem>>, vector<1x32xf32>
    %4 = vector.broadcast %3 : vector<1x32xf32> to vector<256x32xf32>
    %5 = arith.addf %2, %4 : vector<256x32xf32>
    %c0_5 = arith.constant 0 : index
    %c0_6 = arith.constant 0 : index
    %6 = vector.load %arg4[%c0_5, %c0_6] : memref<256x32xf32, #tpu.memory_space<vmem>>, vector<256x32xf32>
    tpu.vector_store %arg4[%c0_5, %c0_6], %5 {strides = array<i32>} : memref<256x32xf32, #tpu.memory_space<vmem>>, vector<256x32xf32>,
    %7 = vector.shape_cast %5 : vector<256x32xf32> to vector<32x8x32xf32>
    %8 = vector.extract_strided_slice %7 {offsets = [0, 0, 0], sizes = [32, 1, 32], strides = [1, 1, 1]} : vector<32x8x32xf32> to vector<32x1x32xf32>
    %9 = vector.broadcast %8 : vector<32x1x32xf32> to vector<32x8x32xf32>
    %10 = arith.mulf %7, %9 : vector<32x8x32xf32>
    %cst_7 = arith.constant dense<0.000000e+00> : vector<32x8xf32>
    %11 = vector.multi_reduction <add>, %10, %cst_7 [2] : vector<32x8x32xf32> to vector<32x8xf32>
    %cst_8 = arith.constant 1.000000e+01 : f32
    %12 = vector.broadcast %cst_8 : f32 to vector<32x8xf32>
    %13 = arith.mulf %11, %12 : vector<32x8xf32>
    %14 = tpu.iota {dimensions = array<i32: 1>} : vector<32x8xi32>
    %c1_i32 = arith.constant 1 : i32
    %15 = vector.broadcast %c1_i32 : i32 to vector<32x8xi32>
    %16 = arith.cmpi sge, %14, %15 : vector<32x8xi32>
    %cst_9 = arith.constant -1.000000e+30 : f32
    %17 = vector.broadcast %cst_9 : f32 to vector<32x8xf32>
    %18 = arith.select %16, %13, %17 : vector<32x8xi1>, vector<32x8xf32>
    %cst_10 = arith.constant dense<0xFF800000> : vector<32xf32>
    %19 = vector.multi_reduction <maximumf>, %18, %cst_10 [1] : vector<32x8xf32> to vector<32xf32>
    %20 = vector.shape_cast %19 : vector<32xf32> to vector<32x1xf32>
    %21 = vector.broadcast %20 : vector<32x1xf32> to vector<32x8xf32>
    %22 = arith.subf %18, %21 : vector<32x8xf32>
    %23 = math.exp %22 : vector<32x8xf32>
    %cst_11 = arith.constant 0.000000e+00 : f32
    %24 = vector.broadcast %cst_11 : f32 to vector<32x8xf32>
    %25 = arith.select %16, %23, %24 : vector<32x8xi1>, vector<32x8xf32>
    %cst_12 = arith.constant dense<0.000000e+00> : vector<32xf32>
    %26 = vector.multi_reduction <add>, %25, %cst_12 [1] : vector<32x8xf32> to vector<32xf32>
    %27 = vector.shape_cast %26 : vector<32xf32> to vector<32x1xf32>
    %28 = math.log %27 : vector<32x1xf32>
    %29 = arith.addf %20, %28 : vector<32x1xf32>
    %30 = vector.broadcast %29 : vector<32x1xf32> to vector<32x8xf32>
    %31 = arith.subf %18, %30 : vector<32x8xf32>
    %c1_i32_13 = arith.constant 1 : i32
    %32 = vector.broadcast %c1_i32_13 : i32 to vector<32x8xi32>
    %33 = arith.cmpi sge, %14, %32 : vector<32x8xi32>
    %c3_i32 = arith.constant 3 : i32
    %34 = vector.broadcast %c3_i32 : i32 to vector<32x8xi32>
    %35 = arith.cmpi sle, %14, %34 : vector<32x8xi32>
    %36 = arith.andi %33, %35 : vector<32x8xi1>
    %37 = arith.extui %36 : vector<32x8xi1> to vector<32x8xi32>
    %38 = arith.sitofp %37 : vector<32x8xi32> to vector<32x8xf32>
    %39 = arith.mulf %31, %38 : vector<32x8xf32>
    %cst_14 = arith.constant dense<0.000000e+00> : vector<32xf32>
    %40 = vector.multi_reduction <add>, %39, %cst_14 [1] : vector<32x8xf32> to vector<32xf32>
    %41 = vector.shape_cast %40 : vector<32xf32> to vector<32x1xf32>
    %cst_15 = arith.constant 0.000000e+00 : f32
    %42 = vector.broadcast %cst_15 : f32 to vector<32x1xf32>
    %43 = arith.subf %42, %41 : vector<32x1xf32>
    %cst_16 = arith.constant 0.333333343 : f32
    %44 = vector.broadcast %cst_16 : f32 to vector<32x1xf32>
    %45 = arith.mulf %43, %44 : vector<32x1xf32>
    %c0_17 = arith.constant 0 : index
    %c0_18 = arith.constant 0 : index
    %46 = vector.load %arg5[%c0_17, %c0_18] : memref<32x1xf32, #tpu.memory_space<vmem>>, vector<32x1xf32>
    tpu.vector_store %arg5[%c0_17, %c0_18], %45 {strides = array<i32>} : memref<32x1xf32, #tpu.memory_space<vmem>>, vector<32x1xf32>,
    return
  }
  func.func @transform_0(%arg0: i32) -> (i32, i32) {
    %c0_i32 = arith.constant 0 : i32
    %c0_i32_0 = arith.constant 0 : i32
    return %arg0, %c0_i32 : i32, i32
  }
  func.func @transform_1(%arg0: i32) -> (i32, i32) {
    %c0_i32 = arith.constant 0 : i32
    %c0_i32_0 = arith.constant 0 : i32
    %c0_i32_1 = arith.constant 0 : i32
    return %c0_i32, %c0_i32_0 : i32, i32
  }
  func.func @transform_2(%arg0: i32) -> (i32, i32) {
    %c0_i32 = arith.constant 0 : i32
    %c0_i32_0 = arith.constant 0 : i32
    %c0_i32_1 = arith.constant 0 : i32
    return %c0_i32, %c0_i32_0 : i32, i32
  }
  func.func @transform_3(%arg0: i32) -> (i32, i32) {
    %c0_i32 = arith.constant 0 : i32
    %c0_i32_0 = arith.constant 0 : i32
    return %arg0, %c0_i32 : i32, i32
  }
  func.func @transform_4(%arg0: i32) -> (i32, i32) {
    %c0_i32 = arith.constant 0 : i32
    %c0_i32_0 = arith.constant 0 : i32
    return %arg0, %c0_i32 : i32, i32
  }
}

</mosaic_0001>

<bundles_post_ra>
// kernel: poi_ssl_forward.1
= control target key start
LH: loop header
LB: loop body
LE: loop exit
PB: predicated region body
PF: predicated region fallthrough
CT: control target
= control target key end

     0   :  { %s1601_s15 = smov 0   ;;  %s2001_s0 = inlined_call_operand.vmem [shape: bf16[512,134], index: 0, kind: input, shape index: {}]   ;;  %s2002_s1 = inlined_call_operand.vmem [shape: bf16[134,32], index: 1, kind: input, shape index: {}]   ;;  %s2003_s2 = inlined_call_operand.vmem [shape: f32[1,32], index: 2, kind: input, shape index: {}]   ;;  %s2004_s3 = inlined_call_operand.vmem [shape: f32[512,32], index: 3, kind: output, shape index: {0}]   ;;  %s2005_s4 = inlined_call_operand.vmem [shape: f32[64,1], index: 4, kind: output, shape index: {1}]  }
   0x1 LB: > { %s1391_s16 = sadd.s32 4294967295, %s1572_s15   ;;  %p1395_p0 = scmp.ge.s32.totalorder %s1572_s15, 1  ;;  %s1572_s15 = sphi %s1601_s15, %s15_s15  }
   0x2   : > { %p167_p1 = scmp.lt.s32.totalorder %s1572_s15, 3 }
   0x4   : > { %p168_p2 = pnand %p1395_p0, %p167_p1 }
   0x5   : > { %s1396_s21 = sshll.u32 (!%p168_p2), %s1391_s16, 5 }
   0x6   : > { %171 = sbr.rel (%p168_p2) target bundleno = 920 (0x398), region = 32  ;;  %p200_p3 = scmp.lt.s32.totalorder (!%p168_p2), %s1396_s21, 63 }
   0xb   : > { %v1493_v0 = vld [vmem:[%s2002_s1 + $0x38] sm:$0xff]   ;;  %v1574_v1 = vmov 0   ;;  %v1494_v2 = vld [vmem:[%s2002_s1 + $0x30] sm:$0xff]   ;;  %s2007_s21 = smov (!%p200_p3, %s1396_s21), 63  ;;  %v1495_v3 = vld [vmem:[%s2002_s1 + $0x28] sm:$0xff]   ;;  %vm470_vm0 = vcmask 48128   ;;  %v717_v43 = vlaneseq }
   0xc   : > { %523 = vmatprep.subr.bf16.mxu0 %v1574_v1  ;;  %1465 = vmatprep.subr.bf16.mxu1 %v1574_v1  ;;  %s1464_s24 = sshll.u32 %s2007_s21, 3  ;;  %v1496_v4 = vld [vmem:[%s2002_s1 + $0x20] sm:$0xff]   ;;  %v1497_v7 = vld [vmem:[%s2002_s1 + $0x18] sm:$0xff]   ;;  %v1498_v8 = vld [vmem:[%s2002_s1 + $0x10] sm:$0xff]   ;;  %vm519_vm1 = vcmask 1042432   ;;  %vm684_vm2 = vcmask 261120  }
   0xd   : > { %524 = vmatpush1.bf16.msra.mxu0 %v1493_v0  ;;  %1474 = vmatpush1.bf16.msra.mxu1 %v1493_v0  ;;  %s1628_s27 = scalar_lea.vmem %s2001_s0, %s1464_s24  ;;  %v1499_v9 = vld [vmem:[%s2002_s1 + $0x8] sm:$0xff]   ;;  %v1500_v10 = vld [vmem:[%s2002_s1] sm:$0xff]   ;;  %v1697_v44 = vshrl.u32 %v717_v43, 7  ;;  %s1712_s20 = scalar_lea.vmem %s2004_s3, %s1464_s24  ;;  %vm1168_vm3 = vcmask 1041409   ;;  %vm1170_vm4 = vcmask 1042434   ;;  %vm1172_vm5 = vcmask 1043459  }
   0xe   : > { %525 = vmatprep.subr.bf16.mxu0 %v1574_v1  ;;  %1466 = vmatprep.subr.bf16.mxu1 %v1574_v1  ;;  %v1504_v5 = vld [vmem:[%s1628_s27 + $0x4] ss:$8 sps:$4 sm:$0xff]   ;;  %v1501_v11 = vld [vmem:[%s2002_s1 + $0x40] ss:$0 sps:$4 sm:$0x77]   ;;  %vm1174_vm6 = vcmask 1044484  }
   0xf   : > { %v1507_v6 = vld [vmem:[%s1628_s27 + $0x84] ss:$8 sps:$4 sm:$0xff]   ;;  %1445 = vmatprep.mubr.msk.bf16.mxu0 %vm470_vm0, %v1504_v5  ;;  %v521_v12 = vsel %vm519_vm1, %v1501_v11, 0  ;;  %v1502_v13 = vld [vmem:[%s1628_s27] ss:$8 sps:$4 sm:$0xff]   ;;  %v1705_v46 = vsub.s32 0, %v1697_v44 }
  0x10   : > { %1453 = vmatprep.mubr.msk.bf16.mxu1 %vm470_vm0, %v1507_v6  ;;  %v1505_v14 = vld [vmem:[%s1628_s27 + $0x80] ss:$8 sps:$4 sm:$0xff]   ;;  %v1508_v15 = vld [vmem:[%s1628_s27 + $0x14] ss:$8 sps:$4 sm:$0xff]   ;;  %v1512_v17 = vld [vmem:[%s1628_s27 + $0x10] ss:$8 sps:$4 sm:$0xff]  }
  0x11   : > { %526 = vmatpush1.bf16.msra.mxu0 %v1494_v2  ;;  %1475 = vmatpush1.bf16.msra.mxu1 %v1494_v2  ;;  %v1510_v16 = vld [vmem:[%s1628_s27 + $0x94] ss:$8 sps:$4 sm:$0xff]   ;;  %v1513_v18 = vld [vmem:[%s1628_s27 + $0x90] ss:$8 sps:$4 sm:$0xff]   ;;  %v1514_v19 = vld [vmem:[%s1628_s27 + $0x24] ss:$8 sps:$4 sm:$0xff]  }
  0x12   : > { %527 = vmatprep.subr.bf16.mxu0 %v1574_v1  ;;  %1467 = vmatprep.subr.bf16.mxu1 %v1574_v1  ;;  %v1516_v20 = vld [vmem:[%s1628_s27 + $0xa4] ss:$8 sps:$4 sm:$0xff]   ;;  %v1518_v21 = vld [vmem:[%s1628_s27 + $0x20] ss:$8 sps:$4 sm:$0xff]   ;;  %v1520_v23 = vld [vmem:[%s1628_s27 + $0x34] ss:$8 sps:$4 sm:$0xff]  }
  0x13   : > { %v1519_v22 = vld [vmem:[%s1628_s27 + $0xa0] ss:$8 sps:$4 sm:$0xff]   ;;  %v1522_v24 = vld [vmem:[%s1628_s27 + $0xb4] ss:$8 sps:$4 sm:$0xff]   ;;  %v1524_v25 = vld [vmem:[%s1628_s27 + $0x30] ss:$8 sps:$4 sm:$0xff]  }
  0x14   : > { %v1525_v26 = vld [vmem:[%s1628_s27 + $0xb0] ss:$8 sps:$4 sm:$0xff]   ;;  %v1526_v27 = vld [vmem:[%s1628_s27 + $0x44] ss:$8 sps:$4 sm:$0xff]   ;;  %v1530_v29 = vld [vmem:[%s1628_s27 + $0x40] ss:$8 sps:$4 sm:$0xff]  }
  0x15   : > { %528 = vmatpush1.bf16.msra.mxu0 %v1495_v3  ;;  %1476 = vmatpush1.bf16.msra.mxu1 %v1495_v3  ;;  %v1528_v28 = vld [vmem:[%s1628_s27 + $0xc4] ss:$8 sps:$4 sm:$0xff]   ;;  %v1531_v30 = vld [vmem:[%s1628_s27 + $0xc0] ss:$8 sps:$4 sm:$0xff]   ;;  %v1532_v31 = vld [vmem:[%s1628_s27 + $0x54] ss:$8 sps:$4 sm:$0xff]  }
  0x16   : > { %529 = vmatprep.subr.bf16.mxu0 %v1574_v1  ;;  %1468 = vmatprep.subr.bf16.mxu1 %v1574_v1  ;;  %v1534_v32 = vld [vmem:[%s1628_s27 + $0xd4] ss:$8 sps:$4 sm:$0xff]   ;;  %v1536_v33 = vld [vmem:[%s1628_s27 + $0x50] ss:$8 sps:$4 sm:$0xff]   ;;  %v1538_v35 = vld [vmem:[%s1628_s27 + $0x64] ss:$8 sps:$4 sm:$0xff]  }
  0x17   : > { %v1537_v34 = vld [vmem:[%s1628_s27 + $0xd0] ss:$8 sps:$4 sm:$0xff]   ;;  %v1540_v36 = vld [vmem:[%s1628_s27 + $0xe4] ss:$8 sps:$4 sm:$0xff]   ;;  %v1542_v37 = vld [vmem:[%s1628_s27 + $0x60] ss:$8 sps:$4 sm:$0xff]  }
  0x18   : > { %v1543_v38 = vld [vmem:[%s1628_s27 + $0xe0] ss:$8 sps:$4 sm:$0xff]   ;;  %v1544_v39 = vld [vmem:[%s1628_s27 + $0x74] ss:$8 sps:$4 sm:$0xff]   ;;  %v1548_v41 = vld [vmem:[%s1628_s27 + $0x70] ss:$8 sps:$4 sm:$0xff]  }
  0x19   : > { %530 = vmatpush1.bf16.msra.mxu0 %v1496_v4  ;;  %1477 = vmatpush1.bf16.msra.mxu1 %v1496_v4  ;;  %v1546_v40 = vld [vmem:[%s1628_s27 + $0xf4] ss:$8 sps:$4 sm:$0xff]   ;;  %v1549_v42 = vld [vmem:[%s1628_s27 + $0xf0] ss:$8 sps:$4 sm:$0xff]   ;;  %v1702_v45 = vld [vmem:[%s2003_s2] ss:$0 sm:$0xff] }
  0x1a   : > { %531 = vmatprep.subr.bf16.mxu0 %v1574_v1  ;;  %1469 = vmatprep.subr.bf16.mxu1 %v1574_v1  ;;  %vm1176_vm7 = vcmask 1045509   ;;  %vm1178_vm8 = vcmask 1046534   ;;  %vm1180_vm9 = vcmask 1047559   ;;  %vm1211_vm11 = vcmask 64512   ;;  %s1401_s21 = sshll.u32 %s1391_s16, 2 }
  0x1b   : > { %p213_p4 = scmp.lt.s32.totalorder %s1401_s21, 7  ;;  %vm1296_vm14 = vcmask 7168  }
  0x1d   : > { %532 = vmatpush1.bf16.msra.mxu0 %v1497_v7  ;;  %1478 = vmatpush1.bf16.msra.mxu1 %v1497_v7  ;;  %s2009_s21 = smov (!%p213_p4, %s1401_s21), 7 }
  0x1e   : > { %533 = vmatprep.subr.bf16.mxu0 %v1574_v1  ;;  %1470 = vmatprep.subr.bf16.mxu1 %v1574_v1  ;;  %s1402_s22 = sshll.u32 %s2009_s21, 3 }
  0x1f   : > { %s216_s25 = scalar_lea.vmem %s2005_s4, %s1402_s22 }
  0x21   : > { %534 = vmatpush1.bf16.msra.mxu0 %v1498_v8  ;;  %1479 = vmatpush1.bf16.msra.mxu1 %v1498_v8 }
  0x22   : > { %535 = vmatprep.subr.bf16.mxu0 %v1574_v1  ;;  %1471 = vmatprep.subr.bf16.mxu1 %v1574_v1 }
  0x25   : > { %536 = vmatpush1.bf16.msra.mxu0 %v1499_v9  ;;  %1480 = vmatpush1.bf16.msra.mxu1 %v1499_v9 }
  0x26   : > { %537 = vmatprep.subr.bf16.mxu0 %v1574_v1  ;;  %1472 = vmatprep.subr.bf16.mxu1 %v1574_v1 }
  0x29   : > { %538 = vmatpush1.bf16.msra.mxu0 %v1500_v10  ;;  %1481 = vmatpush1.bf16.msra.mxu1 %v1500_v10 }
  0x2a   : > { %553 = vmatprep.subr.bf16.mxu0 %v1574_v1  ;;  %1473 = vmatprep.subr.bf16.mxu1 %v1574_v1 }
  0x2d   : > { %554 = vmatpush2.bf16.msra.mxu0 %v521_v12  ;;  %1482 = vmatpush2.bf16.msra.mxu1 %v521_v12 }
  0x30   : > { %556 = vmatmul.mubr.bf16.vlgmr.msra.gmra.mxu0 %v1502_v13  ;;  %620 = vmatmul.mubr.bf16.vlgmr.msra.gmra.mxu1 %v1505_v14 }
  0x31   : > { %1446 = vmatprep.mubr.msk.bf16.mxu0 %vm470_vm0, %v1508_v15  ;;  %1454 = vmatprep.mubr.msk.bf16.mxu1 %vm470_vm0, %v1510_v16 }
  0x38   : > { %564 = vmatmul.mubr.bf16.gmra.mxu0 %v1512_v17  ;;  %628 = vmatmul.mubr.bf16.gmra.mxu1 %v1513_v18 }
  0x39   : > { %1447 = vmatprep.mubr.msk.bf16.mxu0 %vm470_vm0, %v1514_v19  ;;  %1455 = vmatprep.mubr.msk.bf16.mxu1 %vm470_vm0, %v1516_v20 }
  0x40   : > { %572 = vmatmul.mubr.bf16.gmra.mxu0 %v1518_v21  ;;  %636 = vmatmul.mubr.bf16.gmra.mxu1 %v1519_v22 }
  0x41   : > { %1448 = vmatprep.mubr.msk.bf16.mxu0 %vm470_vm0, %v1520_v23  ;;  %1456 = vmatprep.mubr.msk.bf16.mxu1 %vm470_vm0, %v1522_v24 }
  0x48   : > { %580 = vmatmul.mubr.bf16.gmra.mxu0 %v1524_v25  ;;  %644 = vmatmul.mubr.bf16.gmra.mxu1 %v1525_v26 }
  0x49   : > { %1449 = vmatprep.mubr.msk.bf16.mxu0 %vm470_vm0, %v1526_v27  ;;  %1457 = vmatprep.mubr.msk.bf16.mxu1 %vm470_vm0, %v1528_v28 }
  0x50   : > { %588 = vmatmul.mubr.bf16.gmra.mxu0 %v1530_v29  ;;  %652 = vmatmul.mubr.bf16.gmra.mxu1 %v1531_v30 }
  0x51   : > { %1450 = vmatprep.mubr.msk.bf16.mxu0 %vm470_vm0, %v1532_v31  ;;  %1458 = vmatprep.mubr.msk.bf16.mxu1 %vm470_vm0, %v1534_v32 }
  0x58   : > { %596 = vmatmul.mubr.bf16.gmra.mxu0 %v1536_v33  ;;  %660 = vmatmul.mubr.bf16.gmra.mxu1 %v1537_v34 }
  0x59   : > { %1451 = vmatprep.mubr.msk.bf16.mxu0 %vm470_vm0, %v1538_v35  ;;  %1459 = vmatprep.mubr.msk.bf16.mxu1 %vm470_vm0, %v1540_v36 }
  0x60   : > { %604 = vmatmul.mubr.bf16.gmra.mxu0 %v1542_v37  ;;  %668 = vmatmul.mubr.bf16.gmra.mxu1 %v1543_v38 }
  0x61   : > { %1452 = vmatprep.mubr.msk.bf16.mxu0 %vm470_vm0, %v1544_v39  ;;  %1460 = vmatprep.mubr.msk.bf16.mxu1 %vm470_vm0, %v1546_v40 }
  0x68   : > { %612 = vmatmul.mubr.bf16.gmra.mxu0 %v1548_v41  ;;  %676 = vmatmul.mubr.bf16.gmra.mxu1 %v1549_v42 }
  0xf0   : > { %v557_v47 = vpop.f32.mrf.mxu0  ;;  %v621_v48 = vpop.f32.mrf.mxu1 }
  0xf1   : > { %v558_v49 = vadd.f32 %v1702_v45, %v557_v47  ;;  %v622_v50 = vadd.f32 %v1702_v45, %v621_v48 }
  0xf2   : > { %v559_v51 = vpop.f32.mrf.mxu0  ;;  %v623_v52 = vpop.f32.mrf.mxu1 }
  0xf3   : > { %685 = vst.msk [vmem:[%s1712_s20] sm:$0xff] %vm684_vm2, %v558_v49  ;;  %701 = vst.msk [vmem:[%s1712_s20 + $0x80] sm:$0xff] %vm684_vm2, %v622_v50  ;;  %v784_v53 = vrot.slane %v622_v50, %v1705_v46  ;;  %v720_v54 = vrot.slane %v558_v49, %v1705_v46 }
  0xf4   : > { %v560_v55 = vpop.f32.mrf.mxu0  ;;  %v624_v56 = vpop.f32.mrf.mxu1 }
  0xf5   : > { %v561_v57 = vadd.f32 %v1702_v45, %v560_v55  ;;  %v625_v58 = vadd.f32 %v1702_v45, %v624_v56  ;;  %v861_v59 = vmul.f32 %v784_v53, %v622_v50  ;;  %v845_v60 = vmul.f32 %v720_v54, %v558_v49 }
  0xf6   : > { %v562_v61 = vpop.f32.mrf.mxu0  ;;  %v626_v62 = vpop.f32.mrf.mxu1 }
  0xf7   : > { %686 = vst.msk [vmem:[%s1712_s20 + $0x8] sm:$0xff] %vm684_vm2, %v561_v57  ;;  %702 = vst.msk [vmem:[%s1712_s20 + $0x88] sm:$0xff] %vm684_vm2, %v625_v58  ;;  %v925_v63 = vsel %vm684_vm2, %v861_v59, 0.0  ;;  %v877_v0 = vsel %vm684_vm2, %v845_v60, 0.0  ;;  %v724_v1 = vrot.slane %v561_v57, %v1705_v46  ;;  %v788_v2 = vrot.slane %v625_v58, %v1705_v46 }
  0xf8   : > { %v629_v3 = vpop.f32.mrf.mxu1  ;;  %926 = vadd.xlane.f32.xlu1 %v925_v63  ;;  %v565_v4 = vpop.f32.mrf.mxu0  ;;  %878 = vadd.xlane.f32.xlu0 %v877_v0 }
  0xf9   : > { %v630_v5 = vadd.f32 %v1702_v45, %v629_v3  ;;  %v566_v6 = vadd.f32 %v1702_v45, %v565_v4  ;;  %v846_v7 = vmul.f32 %v724_v1, %v561_v57  ;;  %v862_v10 = vmul.f32 %v788_v2, %v625_v58 }
  0xfa   : > { %v567_v8 = vpop.f32.mrf.mxu0  ;;  %v631_v9 = vpop.f32.mrf.mxu1 }
  0xfb   : > { %703 = vst.msk [vmem:[%s1712_s20 + $0x90] sm:$0xff] %vm684_vm2, %v630_v5  ;;  %687 = vst.msk [vmem:[%s1712_s20 + $0x10] sm:$0xff] %vm684_vm2, %v566_v6  ;;  %v880_v11 = vsel %vm684_vm2, %v846_v7, 0.0  ;;  %v728_v12 = vrot.slane %v566_v6, %v1705_v46  ;;  %v792_v13 = vrot.slane %v630_v5, %v1705_v46  ;;  %v928_v21 = vsel %vm684_vm2, %v862_v10, 0.0 }
  0xfc   : > { %v568_v14 = vpop.f32.mrf.mxu0  ;;  %v632_v15 = vpop.f32.mrf.mxu1  ;;  %881 = vadd.xlane.f32.xlu0 %v880_v11 }
  0xfd   : > { %v569_v16 = vadd.f32 %v1702_v45, %v568_v14  ;;  %v633_v17 = vadd.f32 %v1702_v45, %v632_v15  ;;  %v847_v18 = vmul.f32 %v728_v12, %v566_v6  ;;  %v863_v23 = vmul.f32 %v792_v13, %v630_v5 }
  0xfe   : > { %v570_v19 = vpop.f32.mrf.mxu0  ;;  %v634_v20 = vpop.f32.mrf.mxu1 }
  0xff   : > { %688 = vst.msk [vmem:[%s1712_s20 + $0x18] sm:$0xff] %vm684_vm2, %v569_v16  ;;  %704 = vst.msk [vmem:[%s1712_s20 + $0x98] sm:$0xff] %vm684_vm2, %v633_v17  ;;  %v883_v22 = vsel %vm684_vm2, %v847_v18, 0.0  ;;  %v796_v24 = vrot.slane %v633_v17, %v1705_v46  ;;  %v732_v25 = vrot.slane %v569_v16, %v1705_v46  ;;  %v931_v34 = vsel %vm684_vm2, %v863_v23, 0.0 }
 0x100   : > { %v573_v26 = vpop.f32.mrf.mxu0  ;;  %v637_v27 = vpop.f32.mrf.mxu1  ;;  %884 = vadd.xlane.f32.xlu1 %v883_v22  ;;  %929 = vadd.xlane.f32.xlu0 %v928_v21 }
 0x101   : > { %v574_v28 = vadd.f32 %v1702_v45, %v573_v26  ;;  %v638_v29 = vadd.f32 %v1702_v45, %v637_v27  ;;  %v864_v30 = vmul.f32 %v796_v24, %v633_v17  ;;  %v848_v33 = vmul.f32 %v732_v25, %v569_v16 }
 0x102   : > { %v575_v31 = vpop.f32.mrf.mxu0  ;;  %v639_v32 = vpop.f32.mrf.mxu1 }
 0x103   : > { %689 = vst.msk [vmem:[%s1712_s20 + $0x20] sm:$0xff] %vm684_vm2, %v574_v28  ;;  %705 = vst.msk [vmem:[%s1712_s20 + $0xa0] sm:$0xff] %vm684_vm2, %v638_v29  ;;  %v934_v35 = vsel %vm684_vm2, %v864_v30, 0.0  ;;  %v800_v36 = vrot.slane %v638_v29, %v1705_v46  ;;  %v736_v37 = vrot.slane %v574_v28, %v1705_v46  ;;  %v886_v49 = vsel %vm684_vm2, %v848_v33, 0.0 }
 0x104   : > { %v576_v38 = vpop.f32.mrf.mxu0  ;;  %v640_v39 = vpop.f32.mrf.mxu1  ;;  %932 = vadd.xlane.f32.xlu1 %v931_v34  ;;  %935 = vadd.xlane.f32.xlu0 %v934_v35 }
 0x105   : > { %v577_v40 = vadd.f32 %v1702_v45, %v576_v38  ;;  %v641_v41 = vadd.f32 %v1702_v45, %v640_v39  ;;  %v865_v42 = vmul.f32 %v800_v36, %v638_v29  ;;  %v849_v51 = vmul.f32 %v736_v37, %v574_v28 }
 0x106   : > { %v578_v47 = vpop.f32.mrf.mxu0  ;;  %v642_v48 = vpop.f32.mrf.mxu1 }
 0x107   : > { %690 = vst.msk [vmem:[%s1712_s20 + $0x28] sm:$0xff] %vm684_vm2, %v577_v40  ;;  %706 = vst.msk [vmem:[%s1712_s20 + $0xa8] sm:$0xff] %vm684_vm2, %v641_v41  ;;  %v937_v50 = vsel %vm684_vm2, %v865_v42, 0.0  ;;  %v740_v52 = vrot.slane %v577_v40, %v1705_v46  ;;  %v804_v53 = vrot.slane %v641_v41, %v1705_v46  ;;  %v889_v62 = vsel %vm684_vm2, %v849_v51, 0.0 }
 0x108   : > { %v581_v54 = vpop.f32.mrf.mxu0  ;;  %v645_v55 = vpop.f32.mrf.mxu1  ;;  %887 = vadd.xlane.f32.xlu1 %v886_v49  ;;  %938 = vadd.xlane.f32.xlu0 %v937_v50 }
 0x109   : > { %v582_v56 = vadd.f32 %v1702_v45, %v581_v54  ;;  %v646_v57 = vadd.f32 %v1702_v45, %v645_v55  ;;  %v850_v58 = vmul.f32 %v740_v52, %v577_v40  ;;  %v866_v61 = vmul.f32 %v804_v53, %v641_v41 }
 0x10a   : > { %v583_v59 = vpop.f32.mrf.mxu0  ;;  %v647_v60 = vpop.f32.mrf.mxu1 }
 0x10b   : > { %691 = vst.msk [vmem:[%s1712_s20 + $0x30] sm:$0xff] %vm684_vm2, %v582_v56  ;;  %707 = vst.msk [vmem:[%s1712_s20 + $0xb0] sm:$0xff] %vm684_vm2, %v646_v57  ;;  %v892_v63 = vsel %vm684_vm2, %v850_v58, 0.0  ;;  %v808_v0 = vrot.slane %v646_v57, %v1705_v46  ;;  %v744_v1 = vrot.slane %v582_v56, %v1705_v46  ;;  %v940_v9 = vsel %vm684_vm2, %v866_v61, 0.0 }
 0x10c   : > { %v584_v2 = vpop.f32.mrf.mxu0  ;;  %v648_v3 = vpop.f32.mrf.mxu1  ;;  %890 = vadd.xlane.f32.xlu1 %v889_v62  ;;  %893 = vadd.xlane.f32.xlu0 %v892_v63 }
 0x10d   : > { %v585_v4 = vadd.f32 %v1702_v45, %v584_v2  ;;  %v649_v5 = vadd.f32 %v1702_v45, %v648_v3  ;;  %v867_v6 = vmul.f32 %v808_v0, %v646_v57  ;;  %v851_v12 = vmul.f32 %v744_v1, %v582_v56 }
 0x10e   : > { %v586_v7 = vpop.f32.mrf.mxu0  ;;  %v650_v8 = vpop.f32.mrf.mxu1 }
 0x10f   : > { %692 = vst.msk [vmem:[%s1712_s20 + $0x38] sm:$0xff] %vm684_vm2, %v585_v4  ;;  %708 = vst.msk [vmem:[%s1712_s20 + $0xb8] sm:$0xff] %vm684_vm2, %v649_v5  ;;  %v943_v10 = vsel %vm684_vm2, %v867_v6, 0.0  ;;  %v812_v11 = vrot.slane %v649_v5, %v1705_v46  ;;  %v748_v13 = vrot.slane %v585_v4, %v1705_v46  ;;  %v895_v23 = vsel %vm684_vm2, %v851_v12, 0.0 }
 0x110   : > { %v589_v14 = vpop.f32.mrf.mxu0  ;;  %v653_v15 = vpop.f32.mrf.mxu1  ;;  %944 = vadd.xlane.f32.xlu1 %v943_v10  ;;  %941 = vadd.xlane.f32.xlu0 %v940_v9 }
 0x111   : > { %v590_v16 = vadd.f32 %v1702_v45, %v589_v14  ;;  %v654_v17 = vadd.f32 %v1702_v45, %v653_v15  ;;  %v868_v18 = vmul.f32 %v812_v11, %v649_v5  ;;  %v852_v21 = vmul.f32 %v748_v13, %v585_v4 }
 0x112   : > { %v591_v19 = vpop.f32.mrf.mxu0  ;;  %v655_v20 = vpop.f32.mrf.mxu1 }
 0x113   : > { %693 = vst.msk [vmem:[%s1712_s20 + $0x40] sm:$0xff] %vm684_vm2, %v590_v16  ;;  %709 = vst.msk [vmem:[%s1712_s20 + $0xc0] sm:$0xff] %vm684_vm2, %v654_v17  ;;  %v946_v22 = vsel %vm684_vm2, %v868_v18, 0.0  ;;  %v752_v24 = vrot.slane %v590_v16, %v1705_v46  ;;  %v816_v25 = vrot.slane %v654_v17, %v1705_v46  ;;  %v898_v33 = vsel %vm684_vm2, %v852_v21, 0.0 }
 0x114   : > { %v592_v26 = vpop.f32.mrf.mxu0  ;;  %v656_v27 = vpop.f32.mrf.mxu1  ;;  %947 = vadd.xlane.f32.xlu1 %v946_v22  ;;  %896 = vadd.xlane.f32.xlu0 %v895_v23 }
 0x115   : > { %v593_v28 = vadd.f32 %v1702_v45, %v592_v26  ;;  %v657_v29 = vadd.f32 %v1702_v45, %v656_v27  ;;  %v853_v30 = vmul.f32 %v752_v24, %v590_v16  ;;  %v869_v36 = vmul.f32 %v816_v25, %v654_v17 }
 0x116   : > { %v594_v31 = vpop.f32.mrf.mxu0  ;;  %v658_v32 = vpop.f32.mrf.mxu1 }
 0x117   : > { %694 = vst.msk [vmem:[%s1712_s20 + $0x48] sm:$0xff] %vm684_vm2, %v593_v28  ;;  %710 = vst.msk [vmem:[%s1712_s20 + $0xc8] sm:$0xff] %vm684_vm2, %v657_v29  ;;  %v901_v34 = vsel %vm684_vm2, %v853_v30, 0.0  ;;  %v820_v35 = vrot.slane %v657_v29, %v1705_v46  ;;  %v756_v37 = vrot.slane %v593_v28, %v1705_v46  ;;  %v949_v51 = vsel %vm684_vm2, %v869_v36, 0.0 }
 0x118   : > { %v597_v38 = vpop.f32.mrf.mxu0  ;;  %v661_v39 = vpop.f32.mrf.mxu1  ;;  %902 = vadd.xlane.f32.xlu1 %v901_v34  ;;  %899 = vadd.xlane.f32.xlu0 %v898_v33 }
 0x119   : > { %v598_v40 = vadd.f32 %v1702_v45, %v597_v38  ;;  %v662_v41 = vadd.f32 %v1702_v45, %v661_v39  ;;  %v870_v42 = vmul.f32 %v820_v35, %v657_v29  ;;  %v854_v49 = vmul.f32 %v756_v37, %v593_v28 }
 0x11a   : > { %v599_v47 = vpop.f32.mrf.mxu0  ;;  %v663_v48 = vpop.f32.mrf.mxu1 }
 0x11b   : > { %695 = vst.msk [vmem:[%s1712_s20 + $0x50] sm:$0xff] %vm684_vm2, %v598_v40  ;;  %711 = vst.msk [vmem:[%s1712_s20 + $0xd0] sm:$0xff] %vm684_vm2, %v662_v41  ;;  %v952_v50 = vsel %vm684_vm2, %v870_v42, 0.0  ;;  %v824_v52 = vrot.slane %v662_v41, %v1705_v46  ;;  %v760_v53 = vrot.slane %v598_v40, %v1705_v46  ;;  %v904_v61 = vsel %vm684_vm2, %v854_v49, 0.0 }
 0x11c   : > { %v600_v54 = vpop.f32.mrf.mxu0  ;;  %v664_v55 = vpop.f32.mrf.mxu1  ;;  %953 = vadd.xlane.f32.xlu1 %v952_v50  ;;  %950 = vadd.xlane.f32.xlu0 %v949_v51 }
 0x11d   : > { %v601_v56 = vadd.f32 %v1702_v45, %v600_v54  ;;  %v665_v57 = vadd.f32 %v1702_v45, %v664_v55  ;;  %v871_v58 = vmul.f32 %v824_v52, %v662_v41  ;;  %v855_v0 = vmul.f32 %v760_v53, %v598_v40 }
 0x11e   : > { %v602_v59 = vpop.f32.mrf.mxu0  ;;  %v666_v60 = vpop.f32.mrf.mxu1 }
 0x11f   : > { %696 = vst.msk [vmem:[%s1712_s20 + $0x58] sm:$0xff] %vm684_vm2, %v601_v56  ;;  %712 = vst.msk [vmem:[%s1712_s20 + $0xd8] sm:$0xff] %vm684_vm2, %v665_v57  ;;  %v955_v62 = vsel %vm684_vm2, %v871_v58, 0.0  ;;  %v828_v63 = vrot.slane %v665_v57, %v1705_v46  ;;  %v764_v1 = vrot.slane %v601_v56, %v1705_v46  ;;  %v907_v11 = vsel %vm684_vm2, %v855_v0, 0.0 }
 0x120   : > { %v605_v2 = vpop.f32.mrf.mxu0  ;;  %v669_v3 = vpop.f32.mrf.mxu1  ;;  %956 = vadd.xlane.f32.xlu1 %v955_v62  ;;  %905 = vadd.xlane.f32.xlu0 %v904_v61 }
 0x121   : > { %v606_v4 = vadd.f32 %v1702_v45, %v605_v2  ;;  %v670_v5 = vadd.f32 %v1702_v45, %v669_v3  ;;  %v872_v6 = vmul.f32 %v828_v63, %v665_v57  ;;  %v856_v9 = vmul.f32 %v764_v1, %v601_v56 }
 0x122   : > { %v607_v7 = vpop.f32.mrf.mxu0  ;;  %v671_v8 = vpop.f32.mrf.mxu1  ;;  %v1875_v2 = vand.u32 127, %v717_v43 }
 0x123   : > { %697 = vst.msk [vmem:[%s1712_s20 + $0x60] sm:$0xff] %vm684_vm2, %v606_v4  ;;  %713 = vst.msk [vmem:[%s1712_s20 + $0xe0] sm:$0xff] %vm684_vm2, %v670_v5  ;;  %v958_v10 = vsel %vm684_vm2, %v872_v6, 0.0  ;;  %v768_v12 = vrot.slane %v606_v4, %v1705_v46  ;;  %v832_v13 = vrot.slane %v670_v5, %v1705_v46  ;;  %v910_v21 = vsel %vm684_vm2, %v856_v9, 0.0 }
 0x124   : > { %v608_v14 = vpop.f32.mrf.mxu0  ;;  %v672_v15 = vpop.f32.mrf.mxu1  ;;  %959 = vadd.xlane.f32.xlu1 %v958_v10  ;;  %908 = vadd.xlane.f32.xlu0 %v907_v11  ;;  %v1879_v7 = vsub.s32 %v1875_v2, %v1697_v44  ;;  %vm1007_vm10 = vcmp.ge.s32.totalorder %v1875_v2, 1  ;;  %vm1268_vm12 = vcmp.le.s32.totalorder %v1875_v2, 3 }
 0x125   : > { %v609_v16 = vadd.f32 %v1702_v45, %v608_v14  ;;  %v673_v17 = vadd.f32 %v1702_v45, %v672_v15  ;;  %v857_v18 = vmul.f32 %v768_v12, %v606_v4  ;;  %v873_v23 = vmul.f32 %v832_v13, %v670_v5  ;;  %vm1269_vm13 = vmand %vm1007_vm10, %vm1268_vm12 }
 0x126   : > { %v610_v19 = vpop.f32.mrf.mxu0  ;;  %v674_v20 = vpop.f32.mrf.mxu1 }
 0x127   : > { %698 = vst.msk [vmem:[%s1712_s20 + $0x68] sm:$0xff] %vm684_vm2, %v609_v16  ;;  %714 = vst.msk [vmem:[%s1712_s20 + $0xe8] sm:$0xff] %vm684_vm2, %v673_v17  ;;  %v913_v22 = vsel %vm684_vm2, %v857_v18, 0.0  ;;  %v836_v24 = vrot.slane %v673_v17, %v1705_v46  ;;  %v772_v25 = vrot.slane %v609_v16, %v1705_v46  ;;  %v961_v34 = vsel %vm684_vm2, %v873_v23, 0.0 }
 0x128   : > { %v613_v26 = vpop.f32.mrf.mxu0  ;;  %v677_v27 = vpop.f32.mrf.mxu1  ;;  %914 = vadd.xlane.f32.xlu1 %v913_v22  ;;  %911 = vadd.xlane.f32.xlu0 %v910_v21 }
 0x129   : > { %v614_v28 = vadd.f32 %v1702_v45, %v613_v26  ;;  %v678_v29 = vadd.f32 %v1702_v45, %v677_v27  ;;  %v874_v30 = vmul.f32 %v836_v24, %v673_v17  ;;  %v858_v33 = vmul.f32 %v772_v25, %v609_v16 }
 0x12a   : > { %v615_v31 = vpop.f32.mrf.mxu0  ;;  %v679_v32 = vpop.f32.mrf.mxu1 }
 0x12b   : > { %699 = vst.msk [vmem:[%s1712_s20 + $0x70] sm:$0xff] %vm684_vm2, %v614_v28  ;;  %715 = vst.msk [vmem:[%s1712_s20 + $0xf0] sm:$0xff] %vm684_vm2, %v678_v29  ;;  %v964_v35 = vsel %vm684_vm2, %v874_v30, 0.0  ;;  %v776_v36 = vrot.slane %v614_v28, %v1705_v46  ;;  %v840_v37 = vrot.slane %v678_v29, %v1705_v46  ;;  %v916_v49 = vsel %vm684_vm2, %v858_v33, 0.0 }
 0x12c   : > { %v616_v38 = vpop.f32.mrf.mxu0  ;;  %v680_v39 = vpop.f32.mrf.mxu1  ;;  %962 = vadd.xlane.f32.xlu1 %v961_v34  ;;  %965 = vadd.xlane.f32.xlu0 %v964_v35 }
 0x12d   : > { %v617_v40 = vadd.f32 %v1702_v45, %v616_v38  ;;  %v681_v41 = vadd.f32 %v1702_v45, %v680_v39  ;;  %v875_v42 = vmul.f32 %v840_v37, %v678_v29  ;;  %v859_v50 = vmul.f32 %v776_v36, %v614_v28 }
 0x12e   : > { %v618_v47 = vpop.f32.mrf.mxu0  ;;  %v682_v48 = vpop.f32.mrf.mxu1 }
 0x12f   : > { %700 = vst.msk [vmem:[%s1712_s20 + $0x78] sm:$0xff] %vm684_vm2, %v617_v40  ;;  %716 = vst.msk [vmem:[%s1712_s20 + $0xf8] sm:$0xff] %vm684_vm2, %v681_v41  ;;  %v780_v51 = vrot.slane %v617_v40, %v1705_v46  ;;  %v844_v52 = vrot.slane %v681_v41, %v1705_v46  ;;  %v967_v53 = vsel %vm684_vm2, %v875_v42, 0.0  ;;  %v919_v45 = vsel %vm684_vm2, %v859_v50, 0.0 }
 0x130   : > { %917 = vadd.xlane.f32.xlu1 %v916_v49 }
 0x131   : > { %v860_v54 = vmul.f32 %v780_v51, %v617_v40  ;;  %v876_v55 = vmul.f32 %v844_v52, %v681_v41 }
 0x133   : > { %v922_v56 = vsel %vm684_vm2, %v860_v54, 0.0  ;;  %v970_v57 = vsel %vm684_vm2, %v876_v55, 0.0 }
 0x134   : > { %920 = vadd.xlane.f32.xlu1 %v919_v45  ;;  %923 = vadd.xlane.f32.xlu0 %v922_v56 }
 0x138   : > { %971 = vadd.xlane.f32.xlu1 %v970_v57  ;;  %968 = vadd.xlane.f32.xlu0 %v967_v53 }
 0x181   : > { %v879_v58 = vpop.xlane.xlu0 %878  ;;  %v927_v59 = vpop.xlane.xlu1 %926 }
 0x182   : > { %v989_v8 = vmul.f32 10.0, %v927_v59  ;;  %v973_v10 = vmul.f32 10.0, %v879_v58 }
 0x184   : > { %v1107_v19 = vrot.slane %v989_v8, %v1879_v7  ;;  %v1043_v21 = vrot.slane %v973_v10, %v1879_v7 }
 0x185   : > { %v882_v60 = vpop.xlane.xlu0 %881 }
 0x186   : > { %v974_v9 = vmul.f32 10.0, %v882_v60 }
 0x188   : > { %v1047_v44 = vrot.slane %v974_v9, %v1879_v7 }
 0x189   : > { %v885_v61 = vpop.xlane.xlu1 %884  ;;  %v930_v46 = vpop.xlane.xlu0 %929 }
 0x18a   : > { %v990_v3 = vmul.f32 10.0, %v930_v46  ;;  %v975_v11 = vmul.f32 10.0, %v885_v61  ;;  %v1169_v33 = vsel %vm1168_vm3, %v1047_v44, %v1043_v21 }
 0x18c   : > { %v1111_v12 = vrot.slane %v990_v3, %v1879_v7  ;;  %v1051_v22 = vrot.slane %v975_v11, %v1879_v7 }
 0x18d   : > { %v933_v62 = vpop.xlane.xlu1 %932  ;;  %v936_v63 = vpop.xlane.xlu0 %935 }
 0x18e   : > { %v991_v4 = vmul.f32 10.0, %v933_v62  ;;  %v992_v13 = vmul.f32 10.0, %v936_v63  ;;  %v1189_v23 = vsel %vm1168_vm3, %v1111_v12, %v1107_v19  ;;  %v1171_v37 = vsel %vm1170_vm4, %v1051_v22, %v1169_v33 }
 0x190   : > { %v1115_v43 = vrot.slane %v991_v4, %v1879_v7  ;;  %v1119_v24 = vrot.slane %v992_v13, %v1879_v7 }
 0x191   : > { %v888_v0 = vpop.xlane.xlu1 %887  ;;  %v939_v1 = vpop.xlane.xlu0 %938 }
 0x192   : > { %v976_v14 = vmul.f32 10.0, %v888_v0  ;;  %v993_v15 = vmul.f32 10.0, %v939_v1  ;;  %v1190_v27 = vsel %vm1170_vm4, %v1115_v43, %v1189_v23 }
 0x193   : > { %v1191_v38 = vsel %vm1172_vm5, %v1119_v24, %v1190_v27 }
 0x194   : > { %v1055_v25 = vrot.slane %v976_v14, %v1879_v7  ;;  %v1123_v28 = vrot.slane %v993_v15, %v1879_v7 }
 0x195   : > { %v891_v5 = vpop.xlane.xlu1 %890  ;;  %v894_v6 = vpop.xlane.xlu0 %893 }
 0x196   : > { %v977_v16 = vmul.f32 10.0, %v891_v5  ;;  %v978_v26 = vmul.f32 10.0, %v894_v6  ;;  %v1173_v39 = vsel %vm1172_vm5, %v1055_v25, %v1171_v37  ;;  %v1192_v41 = vsel %vm1174_vm6, %v1123_v28, %v1191_v38 }
 0x198   : > { %v1059_v29 = vrot.slane %v977_v16, %v1879_v7  ;;  %v1063_v40 = vrot.slane %v978_v26, %v1879_v7 }
 0x199   : > { %v945_v17 = vpop.xlane.xlu1 %944  ;;  %v942_v18 = vpop.xlane.xlu0 %941 }
 0x19a   : > { %v994_v20 = vmul.f32 10.0, %v942_v18  ;;  %v995_v30 = vmul.f32 10.0, %v945_v17  ;;  %v1175_v42 = vsel %vm1174_vm6, %v1059_v29, %v1173_v39 }
 0x19b   : > { %v1177_v54 = vsel %vm1176_vm7, %v1063_v40, %v1175_v42 }
 0x19c   : > { %v1127_v34 = vrot.slane %v994_v20, %v1879_v7  ;;  %v1131_v47 = vrot.slane %v995_v30, %v1879_v7 }
 0x19d   : > { %v948_v31 = vpop.xlane.xlu1 %947  ;;  %v897_v32 = vpop.xlane.xlu0 %896 }
 0x19e   : > { %v996_v35 = vmul.f32 10.0, %v948_v31  ;;  %v979_v36 = vmul.f32 10.0, %v897_v32  ;;  %v1193_v51 = vsel %vm1176_vm7, %v1127_v34, %v1192_v41 }
 0x19f   : > { %v1194_v58 = vsel %vm1178_vm8, %v1131_v47, %v1193_v51 }
 0x1a0   : > { %v1067_v48 = vrot.slane %v979_v36, %v1879_v7  ;;  %v1135_v52 = vrot.slane %v996_v35, %v1879_v7 }
 0x1a1   : > { %v903_v49 = vpop.xlane.xlu1 %902  ;;  %v900_v50 = vpop.xlane.xlu0 %899 }
 0x1a2   : > { %v980_v53 = vmul.f32 10.0, %v900_v50  ;;  %v1179_v57 = vsel %vm1178_vm8, %v1067_v48, %v1177_v54  ;;  %v1195_v60 = vsel %vm1180_vm9, %v1135_v52, %v1194_v58  ;;  %v981_v10 = vmul.f32 10.0, %v903_v49 }
 0x1a3   : > { %v1920_v0 = vsel %vm1007_vm10, %v1195_v60, -1e+30 }
 0x1a4   : > { %v1071_v55 = vrot.slane %v980_v53, %v1879_v7  ;;  %v1218_v1 = vsel %vm1211_vm11, %v1920_v0, -inf  ;;  %v1075_v18 = vrot.slane %v981_v10, %v1879_v7 }
 0x1a5   : > { %v954_v45 = vpop.xlane.xlu1 %953  ;;  %v951_v56 = vpop.xlane.xlu0 %950 }
 0x1a6   : > { %v1181_v59 = vsel %vm1180_vm9, %v1071_v55, %v1179_v57  ;;  %v998_v13 = vmul.f32 10.0, %v954_v45  ;;  %v997_v14 = vmul.f32 10.0, %v951_v56 }
 0x1a7   : > { %v1914_v61 = vsel %vm1007_vm10, %v1181_v59, -1e+30 }
 0x1a8   : > { %v1212_v46 = vsel %vm1211_vm11, %v1914_v61, -inf  ;;  %v1143_v24 = vrot.slane %v998_v13, %v1879_v7  ;;  %v1139_v25 = vrot.slane %v997_v14, %v1879_v7 }
 0x1a9   : > { %v957_v62 = vpop.xlane.xlu1 %956  ;;  %1213 = vmax.xlane.f32.xlu0 %v1212_v46  ;;  %v906_v63 = vpop.xlane.xlu0 %905 }
 0x1aa   : > { %v982_v8 = vmul.f32 10.0, %v906_v63  ;;  %v999_v15 = vmul.f32 10.0, %v957_v62  ;;  %v1196_v39 = vsel %vm1168_vm3, %v1143_v24, %v1139_v25 }
 0x1ac   : > { %v1079_v43 = vrot.slane %v982_v8, %v1879_v7  ;;  %v1147_v27 = vrot.slane %v999_v15, %v1879_v7 }
 0x1ad   : > { %v960_v3 = vpop.xlane.xlu1 %959  ;;  %1219 = vmax.xlane.f32.xlu0 %v1218_v1  ;;  %v909_v4 = vpop.xlane.xlu0 %908 }
 0x1ae   : > { %v983_v9 = vmul.f32 10.0, %v909_v4  ;;  %v1000_v19 = vmul.f32 10.0, %v960_v3  ;;  %v1182_v26 = vsel %vm1168_vm3, %v1079_v43, %v1075_v18  ;;  %v1197_v40 = vsel %vm1170_vm4, %v1147_v27, %v1196_v39 }
 0x1b0   : > { %v1083_v16 = vrot.slane %v983_v9, %v1879_v7  ;;  %v1151_v30 = vrot.slane %v1000_v19, %v1879_v7 }
 0x1b1   : > { %v915_v5 = vpop.xlane.xlu1 %914  ;;  %v912_v6 = vpop.xlane.xlu0 %911 }
 0x1b2   : > { %v984_v11 = vmul.f32 10.0, %v912_v6  ;;  %v985_v17 = vmul.f32 10.0, %v915_v5  ;;  %v1183_v28 = vsel %vm1170_vm4, %v1083_v16, %v1182_v26  ;;  %v1198_v48 = vsel %vm1172_vm5, %v1151_v30, %v1197_v40 }
 0x1b4   : > { %v1087_v44 = vrot.slane %v984_v11, %v1879_v7  ;;  %v1091_v29 = vrot.slane %v985_v17, %v1879_v7 }
 0x1b5   : > { %v963_v12 = vpop.xlane.xlu1 %962  ;;  %v966_v20 = vpop.xlane.xlu0 %965 }
 0x1b6   : > { %v1001_v22 = vmul.f32 10.0, %v963_v12  ;;  %v1184_v31 = vsel %vm1172_vm5, %v1087_v44, %v1183_v28  ;;  %v1002_v32 = vmul.f32 10.0, %v966_v20 }
 0x1b7   : > { %v1185_v41 = vsel %vm1174_vm6, %v1091_v29, %v1184_v31 }
 0x1b8   : > { %v1155_v36 = vrot.slane %v1001_v22, %v1879_v7  ;;  %v1159_v49 = vrot.slane %v1002_v32, %v1879_v7  ;;  %v1575_v32 = vmov 0.0  }
 0x1b9   : > { %v918_v21 = vpop.xlane.xlu1 %917 }
 0x1ba   : > { %v986_v23 = vmul.f32 10.0, %v918_v21  ;;  %v1199_v53 = vsel %vm1174_vm6, %v1155_v36, %v1198_v48 }
 0x1bb   : > { %v1200_v60 = vsel %vm1176_vm7, %v1159_v49, %v1199_v53 }
 0x1bc   : > { %v1095_v33 = vrot.slane %v986_v23, %v1879_v7 }
 0x1bd   : > { %v921_v34 = vpop.xlane.xlu1 %920  ;;  %v924_v35 = vpop.xlane.xlu0 %923 }
 0x1be   : > { %v987_v37 = vmul.f32 10.0, %v921_v34  ;;  %v988_v38 = vmul.f32 10.0, %v924_v35  ;;  %v1186_v50 = vsel %vm1176_vm7, %v1095_v33, %v1185_v41  ;;  %v1461_v33 = vsel %vm1269_vm13, 1.0, %v1575_v32 }
 0x1c0   : > { %v1099_v42 = vrot.slane %v987_v37, %v1879_v7  ;;  %v1103_v47 = vrot.slane %v988_v38, %v1879_v7 }
 0x1c1   : > { %v972_v51 = vpop.xlane.xlu1 %971  ;;  %v969_v52 = vpop.xlane.xlu0 %968 }
 0x1c2   : > { %v1004_v54 = vmul.f32 10.0, %v972_v51  ;;  %v1003_v55 = vmul.f32 10.0, %v969_v52  ;;  %v1187_v45 = vsel %vm1178_vm8, %v1099_v42, %v1186_v50 }
 0x1c3   : > { %v1188_v56 = vsel %vm1180_vm9, %v1103_v47, %v1187_v45 }
 0x1c4   : > { %v1167_v57 = vrot.slane %v1004_v54, %v1879_v7  ;;  %v1163_v58 = vrot.slane %v1003_v55, %v1879_v7  ;;  %v1953_v59 = vsel %vm1007_vm10, %v1188_v56, -1e+30 }
 0x1c5   : > { %v1215_v46 = vsel %vm1211_vm11, %v1953_v59, -inf }
 0x1c6   : > { %1216 = vmax.xlane.f32.xlu1 %v1215_v46  ;;  %v1201_v62 = vsel %vm1178_vm8, %v1163_v58, %v1200_v60 }
 0x1c7   : > { %v1202_v63 = vsel %vm1180_vm9, %v1167_v57, %v1201_v62 }
 0x1c8   : > { %v1962_v1 = vsel %vm1007_vm10, %v1202_v63, -1e+30 }
 0x1c9   : > { %v1221_v7 = vsel %vm1211_vm11, %v1962_v1, -inf }
 0x1ca   : > { %1222 = vmax.xlane.f32.xlu1 %v1221_v7 }
 0x232   : > { %v1214_v3 = vpop.xlane.xlu0 %1213 }
 0x233   : > { %v1224_v4 = vsub.f32 %v1914_v61, %v1214_v3 }
 0x235   : > { %v1228_v5 = vmul.f32 1.442695, %v1224_v4 }
 0x236   : > { %v1220_v6 = vpop.xlane.xlu0 %1219 }
 0x237   : > { %1550 = vpow2.f32 %v1228_v5  ;;  %v1226_v8 = vsub.f32 %v1920_v0, %v1220_v6 }
 0x239   : > { %v1232_v9 = vmul.f32 1.442695, %v1226_v8 }
 0x23b   : > { %1552 = vpow2.f32 %v1232_v9 }
 0x244   : > { %v1551_v10 = vpop.eup %1550 }
 0x245   : > { %v1236_v11 = vsel %vm1007_vm10, %v1551_v10, 0.0 }
 0x246   : > { %v1240_v12 = vsel %vm1211_vm11, %v1236_v11, 0.0 }
 0x247   : > { %1241 = vadd.xlane.f32.xlu0 %v1240_v12 }
 0x248   : > { %v1553_v13 = vpop.eup %1552 }
 0x249   : > { %v1238_v14 = vsel %vm1007_vm10, %v1553_v13, 0.0 }
 0x24a   : > { %v1246_v43 = vsel %vm1211_vm11, %v1238_v14, 0.0 }
 0x24b   : > { %1247 = vadd.xlane.f32.xlu0 %v1246_v43 }
 0x24f   : > { %v1217_v15 = vpop.xlane.xlu1 %1216 }
 0x250   : > { %v1225_v16 = vsub.f32 %v1953_v59, %v1217_v15 }
 0x252   : > { %v1230_v17 = vmul.f32 1.442695, %v1225_v16 }
 0x253   : > { %v1223_v18 = vpop.xlane.xlu1 %1222 }
 0x254   : > { %1554 = vpow2.f32 %v1230_v17  ;;  %v1227_v19 = vsub.f32 %v1962_v1, %v1223_v18 }
 0x256   : > { %v1234_v44 = vmul.f32 1.442695, %v1227_v19 }
 0x258   : > { %1556 = vpow2.f32 %v1234_v44 }
 0x261   : > { %v1555_v20 = vpop.eup %1554 }
 0x262   : > { %v1237_v21 = vsel %vm1007_vm10, %v1555_v20, 0.0 }
 0x263   : > { %v1243_v22 = vsel %vm1211_vm11, %v1237_v21, 0.0 }
 0x264   : > { %1244 = vadd.xlane.f32.xlu1 %v1243_v22 }
 0x265   : > { %v1557_v23 = vpop.eup %1556 }
 0x266   : > { %v1239_v24 = vsel %vm1007_vm10, %v1557_v23, 0.0 }
 0x267   : > { %v1249_v25 = vsel %vm1211_vm11, %v1239_v24, 0.0 }
 0x268   : > { %1250 = vadd.xlane.f32.xlu1 %v1249_v25 }
 0x2d0   : > { %v1242_v26 = vpop.xlane.xlu0 %1241 }
 0x2d1   : > { %1558 = vlog2.f32 %v1242_v26 }
 0x2d4   : > { %v1248_v27 = vpop.xlane.xlu0 %1247 }
 0x2d5   : > { %1560 = vlog2.f32 %v1248_v27 }
 0x2de   : > { %v1559_v28 = vpop.eup %1558 }
 0x2df   : > { %v1253_v29 = vmul.f32 0.6931472, %v1559_v28 }
 0x2e1   : > { %v1260_v30 = vadd.f32 %v1253_v29, %v1214_v3 }
 0x2e2   : > { %v1561_v31 = vpop.eup %1560 }
 0x2e3   : > { %v1257_v34 = vmul.f32 0.6931472, %v1561_v31  ;;  %v1264_v35 = vsub.f32 %v1914_v61, %v1260_v30 }
 0x2e5   : > { %v1262_v36 = vadd.f32 %v1257_v34, %v1220_v6  ;;  %v1272_v37 = vmul.f32 %v1461_v33, %v1264_v35 }
 0x2e7   : > { %v1276_v38 = vsel %vm1211_vm11, %v1272_v37, 0.0  ;;  %v1266_v39 = vsub.f32 %v1920_v0, %v1262_v36 }
 0x2e8   : > { %1277 = vadd.xlane.f32.xlu0 %v1276_v38 }
 0x2e9   : > { %v1274_v40 = vmul.f32 %v1461_v33, %v1266_v39 }
 0x2eb   : > { %v1282_v41 = vsel %vm1211_vm11, %v1274_v40, 0.0 }
 0x2ec   : > { %1283 = vadd.xlane.f32.xlu0 %v1282_v41 }
 0x2ed   : > { %v1245_v2 = vpop.xlane.xlu1 %1244 }
 0x2ee   : > { %1562 = vlog2.f32 %v1245_v2 }
 0x2f1   : > { %v1251_v42 = vpop.xlane.xlu1 %1250 }
 0x2f2   : > { %1564 = vlog2.f32 %v1251_v42 }
 0x2fb   : > { %v1563_v47 = vpop.eup %1562 }
 0x2fc   : > { %v1255_v48 = vmul.f32 0.6931472, %v1563_v47 }
 0x2fe   : > { %v1261_v49 = vadd.f32 %v1255_v48, %v1217_v15 }
 0x2ff   : > { %v1565_v61 = vpop.eup %1564 }
 0x300   : > { %v1259_v50 = vmul.f32 0.6931472, %v1565_v61  ;;  %v1265_v51 = vsub.f32 %v1953_v59, %v1261_v49 }
 0x302   : > { %v1263_v52 = vadd.f32 %v1259_v50, %v1223_v18  ;;  %v1273_v53 = vmul.f32 %v1461_v33, %v1265_v51 }
 0x304   : > { %v1279_v0 = vsel %vm1211_vm11, %v1273_v53, 0.0  ;;  %v1267_v54 = vsub.f32 %v1962_v1, %v1263_v52 }
 0x305   : > { %1280 = vadd.xlane.f32.xlu1 %v1279_v0 }
 0x306   : > { %v1275_v55 = vmul.f32 %v1461_v33, %v1267_v54 }
 0x308   : > { %v1285_v45 = vsel %vm1211_vm11, %v1275_v55, 0.0 }
 0x309   : > { %1286 = vadd.xlane.f32.xlu1 %v1285_v45 }
 0x371   : > { %v1278_v56 = vpop.xlane.xlu0 %1277 }
 0x372   : > { %v1288_v57 = vsub.f32 0.0, %v1278_v56 }
 0x374   : > { %v1292_v58 = vmul.f32 0.33333334, %v1288_v57 }
 0x375   : > { %v1284_v59 = vpop.xlane.xlu0 %1283 }
 0x376   : > { %1297 = vst.msk [vmem:[%s216_s25] sm:$0xff] %vm1296_vm14, %v1292_v58  ;;  %v1290_v60 = vsub.f32 0.0, %v1284_v59 }
 0x378   : > { %v1294_v1 = vmul.f32 0.33333334, %v1290_v60 }
 0x37a   : > { %1299 = vst.msk [vmem:[%s216_s25 + $0x10] sm:$0xff] %vm1296_vm14, %v1294_v1 }
 0x38e   : > { %v1281_v46 = vpop.xlane.xlu1 %1280 }
 0x38f   : > { %v1289_v62 = vsub.f32 0.0, %v1281_v46 }
 0x391   : > { %v1293_v63 = vmul.f32 0.33333334, %v1289_v62 }
 0x392   : > { %v1287_v7 = vpop.xlane.xlu1 %1286 }
 0x393   : > { %1298 = vst.msk [vmem:[%s216_s25 + $0x8] sm:$0xff] %vm1296_vm14, %v1293_v63  ;;  %v1291_v3 = vsub.f32 0.0, %v1287_v7 }
 0x395   : > { %v1295_v4 = vmul.f32 0.33333334, %v1291_v3 }
 0x397   : > { %1300 = vst.msk [vmem:[%s216_s25 + $0x18] sm:$0xff] %vm1296_vm14, %v1295_v4 }
 0x398 PF: > { %s15_s15 = sadd.s32 1, %s1572_s15  }
 0x399   : > { %p12_p5 = scmp.ge.s32.totalorder %s15_s15, 4  }
 0x39b   :  { %14 = sbr.rel (!%p12_p5) target bundleno = 1 (0x1), region = 74 }

</bundles_post_ra>
